<compile_context>
chip_gen: v7x
topology: tpu7x:2x2x1
jax: 0.10.0
libtpu: 0.0.40
codegen_flags: <defaults>
</compile_context>

<pallas_src>
import functools

import jax
import jax.numpy as jnp
from jax import lax
from jax.experimental import pallas as pl
from jax.experimental.pallas import tpu as pltpu


def _mha_kernel(vl_ref,                        # SMEM scalar-prefetch: (B,) int32
                q_ref,                         # (1, TQ, Dq) VMEM tile
                k_ref, v_ref,                  # (1, S, Dk) / (1, S, Dv) VMEM tiles
                wqt_ref, wkt_ref, wvt_ref,     # (Din, H) pre-transposed; Wq pre-scaled
                wot_ref,                       # (H, H) = Wo.T
                out_ref,                       # (1, TQ, H)
                *, num_heads, head_dim):
    b = pl.program_id(0)
    cdt = q_ref.dtype                          # MXU input dtype (f32 or bf16)

    q = q_ref[0]                               # (TQ, Dq)
    k = k_ref[0]                               # (S,  Dk)
    v = v_ref[0]                               # (S,  Dv)

    # Fused full-width projections (one near-full MXU pass each; the
    # 1/sqrt(Dh) scale rides inside wqt).  f32 accumulation.
    q_all = jnp.dot(q, wqt_ref[...], preferred_element_type=jnp.float32).astype(cdt)
    k_all = jnp.dot(k, wkt_ref[...], preferred_element_type=jnp.float32).astype(cdt)
    v_all = jnp.dot(v, wvt_ref[...], preferred_element_type=jnp.float32).astype(cdt)

    tq = q.shape[0]
    s = k.shape[0]
    vlen = vl_ref[b]
    key_pos = lax.broadcasted_iota(jnp.int32, (tq, s), 1)
    mask = key_pos < vlen                      # mask over key positions only

    o_heads = []
    for h in range(num_heads):                 # static loop; lane slices of cached proj
        lo = h * head_dim
        hi = lo + head_dim
        q_h = q_all[:, lo:hi]                  # (TQ, Dh)
        k_h = k_all[:, lo:hi]                  # (S,  Dh)
        v_h = v_all[:, lo:hi]                  # (S,  Dh)

        # Q @ K^T without an on-chip transpose: contract the last dims.
        scores = lax.dot_general(q_h, k_h, (((1,), (1,)), ((), ())),
                                 preferred_element_type=jnp.float32)   # (TQ, S)
        scores = jnp.where(mask, scores, jnp.float32(-1e6))
        scores = scores - jnp.max(scores, axis=-1, keepdims=True)
        p = jnp.exp(scores)                                            # f32 softmax
        p = p * pl.reciprocal(jnp.sum(p, axis=-1, keepdims=True), approx=True)

        o_heads.append(
            jnp.dot(p.astype(cdt), v_h, preferred_element_type=jnp.float32))  # (TQ, Dh)

    # Concatenate heads and do one full-width output projection; single store.
    o_concat = jnp.concatenate(o_heads, axis=-1).astype(cdt)           # (TQ, H)
    out = jnp.dot(o_concat, wot_ref[...], preferred_element_type=jnp.float32)
    out_ref[0] = out.astype(out_ref.dtype)


def multihead_attention(queries, keys, values, valid_lens,
                        wq, wk, wv, wo, num_heads, *,
                        compute_dtype=None, q_tile=None):
    """Forward pass of the MultiHeadAttention module (eval mode, no bias)."""
    B, S, Dq = queries.shape
    Dk = keys.shape[-1]
    Dv = values.shape[-1]
    H = wq.shape[0]
    assert H % num_heads == 0, "num_hiddens must be divisible by num_heads"
    Dh = H // num_heads
    out_dtype = queries.dtype

    if valid_lens is None:
        valid_lens = jnp.full((B,), S, dtype=jnp.int32)
    valid_lens = valid_lens.astype(jnp.int32)

    cdt = out_dtype if compute_dtype is None else compute_dtype

    # Host-side weight prep: transpose to (in, out) layout; fold softmax scale
    # into W_q so no per-(S,S) multiply is needed in the kernel.
    scale = 1.0 / (float(Dh) ** 0.5)
    wqt = (wq.T * scale).astype(cdt)
    wkt = wk.T.astype(cdt)
    wvt = wv.T.astype(cdt)
    wot = wo.T.astype(cdt)

    q = queries.astype(cdt)
    k = keys.astype(cdt)
    v = values.astype(cdt)

    # Query tiling: caps the in-flight (TQ, S) scores tensor and gives the
    # grid a second parallel axis (v7x has 2 TensorCores).
    if q_tile is None:
        q_tile = S if S <= 256 else 128
    assert S % q_tile == 0, "sequence length must be a multiple of the query tile"
    n_qt = S // q_tile

    kernel = functools.partial(_mha_kernel, num_heads=num_heads, head_dim=Dh)

    grid_spec = pltpu.PrefetchScalarGridSpec(
        num_scalar_prefetch=1,
        grid=(B, n_qt),
        in_specs=[
            pl.BlockSpec((1, q_tile, Dq), lambda b, t, vl: (b, t, 0)),   # queries tile
            pl.BlockSpec((1, S, Dk), lambda b, t, vl: (b, 0, 0)),        # keys (full seq)
            pl.BlockSpec((1, S, Dv), lambda b, t, vl: (b, 0, 0)),        # values (full seq)
            pl.BlockSpec((Dq, H), lambda b, t, vl: (0, 0)),              # Wq.T * scale (resident)
            pl.BlockSpec((Dk, H), lambda b, t, vl: (0, 0)),              # Wk.T (resident)
            pl.BlockSpec((Dv, H), lambda b, t, vl: (0, 0)),              # Wv.T (resident)
            pl.BlockSpec((H, H), lambda b, t, vl: (0, 0)),               # Wo.T (resident)
        ],
        out_specs=pl.BlockSpec((1, q_tile, H), lambda b, t, vl: (b, t, 0)),
    )

    return pl.pallas_call(
        kernel,
        out_shape=jax.ShapeDtypeStruct((B, S, H), out_dtype),
        grid_spec=grid_spec,
        compiler_params=pltpu.CompilerParams(
            dimension_semantics=("parallel", "parallel"),
            vmem_limit_bytes=64 * 1024 * 1024),
    )(valid_lens, q, k, v, wqt, wkt, wvt, wot)


def _reference_mha(q, k, v, vl, wq, wk, wv, wo, num_heads):
    """Pure-JAX reference mirroring the PyTorch module (eval mode)."""
    B, S, _ = q.shape
    nh = wq.shape[0]
    Dh = nh // num_heads

    def proj(x, w):
        y = x @ w.T                                        # (B, S, nh)
        y = y.reshape(B, S, num_heads, Dh).transpose(0, 2, 1, 3)
        return y.reshape(B * num_heads, S, Dh)             # transpose_qkv

    Q, K, V = proj(q, wq), proj(k, wk), proj(v, wv)
    vl_rep = jnp.repeat(vl, num_heads)                     # repeat_interleave
    scores = jnp.einsum('bqd,bkd->bqk', Q, K) / jnp.sqrt(jnp.float32(Dh))
    mask = jnp.arange(S)[None, None, :] < vl_rep[:, None, None]
    scores = jnp.where(mask, scores, -1e6)
    p = jax.nn.softmax(scores, axis=-1)
    O = jnp.einsum('bqk,bkd->bqd', p, V)
    Oc = O.reshape(B, num_heads, S, Dh).transpose(0, 2, 1, 3).reshape(B, S, nh)
    return Oc @ wo.T


if __name__ == "__main__":
    # Small shapes consistent with the module.
    B, S = 2, 8
    key_size = query_size = value_size = 32
    num_hiddens, num_heads = 32, 4

    key = jax.random.PRNGKey(0)
    k0, k1, k2, k3, k4, k5, k6 = jax.random.split(key, 7)

    queries = jax.random.normal(k0, (B, S, query_size), jnp.float32)
    keys = jax.random.normal(k1, (B, S, key_size), jnp.float32)
    values = jax.random.normal(k2, (B, S, value_size), jnp.float32)
    valid_lens = jnp.array([3, 6], dtype=jnp.int32)

    # Deterministic Linear weights (PyTorch layout: (out_features, in_features), bias=False).
    def init_w(k, out_f, in_f):
        bound = 1.0 / (in_f ** 0.5)
        return jax.random.uniform(k, (out_f, in_f), jnp.float32, -bound, bound)

    wq = init_w(k3, num_hiddens, query_size)
    wk = init_w(k4, num_hiddens, key_size)
    wv = init_w(k5, num_hiddens, value_size)
    wo = init_w(k6, num_hiddens, num_hiddens)

    ref = _reference_mha(queries, keys, values, valid_lens,
                         wq, wk, wv, wo, num_heads)

    # f32 path (matches PyTorch eval-mode semantics; approx reciprocal in softmax).
    out = multihead_attention(queries, keys, values, valid_lens,
                              wq, wk, wv, wo, num_heads)
    out = jax.block_until_ready(out)
    assert out.shape == (B, S, num_hiddens)
    assert jnp.allclose(out, ref, rtol=5e-3, atol=5e-3), \
        f"f32 max abs err {jnp.max(jnp.abs(out - ref))}"

    # bf16 MXU path (activations/weights cast to bf16, f32 accumulation + softmax).
    out_bf16 = multihead_attention(queries, keys, values, valid_lens,
                                   wq, wk, wv, wo, num_heads,
                                   compute_dtype=jnp.bfloat16)
    out_bf16 = jax.block_until_ready(out_bf16)
    assert jnp.allclose(out_bf16, ref, rtol=5e-2, atol=5e-2), \
        f"bf16 max abs err {jnp.max(jnp.abs(out_bf16 - ref))}"

    # TODO(synk): training-mode dropout inside the attention is not implemented
    # (eval-mode identity, matching the module's inference behavior).
    print("KERNEL_OK")
</pallas_src>

<mosaic_0001>
module attributes {stable_mosaic.version = 11 : i64} {
  func.func @_mha_kernel(%arg0: i32, %arg1: i32, %arg2: memref<2xi32, #tpu.memory_space<smem>>, %arg3: memref<1x8x32xf32, #tpu.memory_space<vmem>>, %arg4: memref<1x8x32xf32, #tpu.memory_space<vmem>>, %arg5: memref<1x8x32xf32, #tpu.memory_space<vmem>>, %arg6: memref<32x32xf32, #tpu.memory_space<vmem>>, %arg7: memref<32x32xf32, #tpu.memory_space<vmem>>, %arg8: memref<32x32xf32, #tpu.memory_space<vmem>>, %arg9: memref<32x32xf32, #tpu.memory_space<vmem>>, %arg10: memref<1x8x32xf32, #tpu.memory_space<vmem>>) attributes {dimension_semantics = [#tpu.dimension_semantics<parallel>, #tpu.dimension_semantics<parallel>], iteration_bounds = array<i64: 2, 1>, scalar_prefetch = 1 : i64, scratch_operands = 0 : i64, tpu.core_type = #tpu.core_type<tc>, window_params = [{transform_indices = @transform_0, window_bounds = array<i64: 1, 8, 32>}, {transform_indices = @transform_1, window_bounds = array<i64: 1, 8, 32>}, {transform_indices = @transform_2, window_bounds = array<i64: 1, 8, 32>}, {pipeline_mode = #tpu.pipeline_mode<synchronous>, transform_indices = @transform_3, window_bounds = array<i64: 32, 32>}, {pipeline_mode = #tpu.pipeline_mode<synchronous>, transform_indices = @transform_4, window_bounds = array<i64: 32, 32>}, {pipeline_mode = #tpu.pipeline_mode<synchronous>, transform_indices = @transform_5, window_bounds = array<i64: 32, 32>}, {pipeline_mode = #tpu.pipeline_mode<synchronous>, transform_indices = @transform_6, window_bounds = array<i64: 32, 32>}, {transform_indices = @transform_7, window_bounds = array<i64: 1, 8, 32>}]} {
    %c0 = arith.constant 0 : index
    %c0_0 = arith.constant 0 : index
    %c0_1 = arith.constant 0 : index
    %0 = vector.load %arg3[%c0, %c0_0, %c0_1] : memref<1x8x32xf32, #tpu.memory_space<vmem>>, vector<1x8x32xf32>
    %1 = vector.shape_cast %0 : vector<1x8x32xf32> to vector<8x32xf32>
    %c0_2 = arith.constant 0 : index
    %c0_3 = arith.constant 0 : index
    %c0_4 = arith.constant 0 : index
    %2 = vector.load %arg4[%c0_2, %c0_3, %c0_4] : memref<1x8x32xf32, #tpu.memory_space<vmem>>, vector<1x8x32xf32>
    %3 = vector.shape_cast %2 : vector<1x8x32xf32> to vector<8x32xf32>
    %c0_5 = arith.constant 0 : index
    %c0_6 = arith.constant 0 : index
    %c0_7 = arith.constant 0 : index
    %4 = vector.load %arg5[%c0_5, %c0_6, %c0_7] : memref<1x8x32xf32, #tpu.memory_space<vmem>>, vector<1x8x32xf32>
    %5 = vector.shape_cast %4 : vector<1x8x32xf32> to vector<8x32xf32>
    %c0_8 = arith.constant 0 : index
    %c0_9 = arith.constant 0 : index
    %6 = vector.load %arg6[%c0_8, %c0_9] : memref<32x32xf32, #tpu.memory_space<vmem>>, vector<32x32xf32>
    %cst = arith.constant dense<0.000000e+00> : vector<8x32xf32>
    %7 = tpu.matmul %1, %6, %cst {dimension_numbers = #tpu.dot_dimension_numbers<[1], [0], [0], [1], [0, 0, 1, 1], [], []>} : vector<8x32xf32>, vector<32x32xf32>, vector<8x32xf32> -> vector<8x32xf32>
    %c0_10 = arith.constant 0 : index
    %c0_11 = arith.constant 0 : index
    %8 = vector.load %arg7[%c0_10, %c0_11] : memref<32x32xf32, #tpu.memory_space<vmem>>, vector<32x32xf32>
    %cst_12 = arith.constant dense<0.000000e+00> : vector<8x32xf32>
    %9 = tpu.matmul %3, %8, %cst_12 {dimension_numbers = #tpu.dot_dimension_numbers<[1], [0], [0], [1], [0, 0, 1, 1], [], []>} : vector<8x32xf32>, vector<32x32xf32>, vector<8x32xf32> -> vector<8x32xf32>
    %c0_13 = arith.constant 0 : index
    %c0_14 = arith.constant 0 : index
    %10 = vector.load %arg8[%c0_13, %c0_14] : memref<32x32xf32, #tpu.memory_space<vmem>>, vector<32x32xf32>
    %cst_15 = arith.constant dense<0.000000e+00> : vector<8x32xf32>
    %11 = tpu.matmul %5, %10, %cst_15 {dimension_numbers = #tpu.dot_dimension_numbers<[1], [0], [0], [1], [0, 0, 1, 1], [], []>} : vector<8x32xf32>, vector<32x32xf32>, vector<8x32xf32> -> vector<8x32xf32>
    %12 = arith.index_cast %arg0 : i32 to index
    %13 = memref.load %arg2[%12] : memref<2xi32, #tpu.memory_space<smem>>
    %14 = tpu.iota {dimensions = array<i32: 1>} : vector<8x8xi32>
    %15 = vector.broadcast %13 : i32 to vector<8x8xi32>
    %16 = arith.cmpi slt, %14, %15 : vector<8x8xi32>
    %17 = vector.extract_strided_slice %7 {offsets = [0, 0], sizes = [8, 8], strides = [1, 1]} : vector<8x32xf32> to vector<8x8xf32>
    %18 = vector.extract_strided_slice %9 {offsets = [0, 0], sizes = [8, 8], strides = [1, 1]} : vector<8x32xf32> to vector<8x8xf32>
    %19 = vector.extract_strided_slice %11 {offsets = [0, 0], sizes = [8, 8], strides = [1, 1]} : vector<8x32xf32> to vector<8x8xf32>
    %cst_16 = arith.constant dense<0.000000e+00> : vector<8x8xf32>
    %20 = tpu.matmul %17, %18, %cst_16 {dimension_numbers = #tpu.dot_dimension_numbers<[1], [1], [0], [0], [0, 0, 1, 0], [], []>} : vector<8x8xf32>, vector<8x8xf32>, vector<8x8xf32> -> vector<8x8xf32>
    %cst_17 = arith.constant -1.000000e+06 : f32
    %21 = vector.broadcast %cst_17 : f32 to vector<8x8xf32>
    %22 = arith.select %16, %20, %21 : vector<8x8xi1>, vector<8x8xf32>
    %cst_18 = arith.constant dense<0xFF800000> : vector<8xf32>
    %23 = vector.multi_reduction <maximumf>, %22, %cst_18 [1] : vector<8x8xf32> to vector<8xf32>
    %24 = vector.shape_cast %23 : vector<8xf32> to vector<8x1xf32>
    %25 = vector.broadcast %24 : vector<8x1xf32> to vector<8x8xf32>
    %26 = arith.subf %22, %25 : vector<8x8xf32>
    %27 = math.exp %26 : vector<8x8xf32>
    %cst_19 = arith.constant dense<0.000000e+00> : vector<8xf32>
    %28 = vector.multi_reduction <add>, %27, %cst_19 [1] : vector<8x8xf32> to vector<8xf32>
    %29 = vector.shape_cast %28 : vector<8xf32> to vector<8x1xf32>
    %30 = tpu.reciprocal %29 {approx = true} : vector<8x1xf32> -> vector<8x1xf32>
    %31 = vector.broadcast %30 : vector<8x1xf32> to vector<8x8xf32>
    %32 = arith.mulf %27, %31 : vector<8x8xf32>
    %cst_20 = arith.constant dense<0.000000e+00> : vector<8x8xf32>
    %33 = tpu.matmul %32, %19, %cst_20 {dimension_numbers = #tpu.dot_dimension_numbers<[1], [0], [0], [1], [0, 0, 1, 1], [], []>} : vector<8x8xf32>, vector<8x8xf32>, vector<8x8xf32> -> vector<8x8xf32>
    %34 = vector.extract_strided_slice %7 {offsets = [0, 8], sizes = [8, 8], strides = [1, 1]} : vector<8x32xf32> to vector<8x8xf32>
    %35 = vector.extract_strided_slice %9 {offsets = [0, 8], sizes = [8, 8], strides = [1, 1]} : vector<8x32xf32> to vector<8x8xf32>
    %36 = vector.extract_strided_slice %11 {offsets = [0, 8], sizes = [8, 8], strides = [1, 1]} : vector<8x32xf32> to vector<8x8xf32>
    %cst_21 = arith.constant dense<0.000000e+00> : vector<8x8xf32>
    %37 = tpu.matmul %34, %35, %cst_21 {dimension_numbers = #tpu.dot_dimension_numbers<[1], [1], [0], [0], [0, 0, 1, 0], [], []>} : vector<8x8xf32>, vector<8x8xf32>, vector<8x8xf32> -> vector<8x8xf32>
    %cst_22 = arith.constant -1.000000e+06 : f32
    %38 = vector.broadcast %cst_22 : f32 to vector<8x8xf32>
    %39 = arith.select %16, %37, %38 : vector<8x8xi1>, vector<8x8xf32>
    %cst_23 = arith.constant dense<0xFF800000> : vector<8xf32>
    %40 = vector.multi_reduction <maximumf>, %39, %cst_23 [1] : vector<8x8xf32> to vector<8xf32>
    %41 = vector.shape_cast %40 : vector<8xf32> to vector<8x1xf32>
    %42 = vector.broadcast %41 : vector<8x1xf32> to vector<8x8xf32>
    %43 = arith.subf %39, %42 : vector<8x8xf32>
    %44 = math.exp %43 : vector<8x8xf32>
    %cst_24 = arith.constant dense<0.000000e+00> : vector<8xf32>
    %45 = vector.multi_reduction <add>, %44, %cst_24 [1] : vector<8x8xf32> to vector<8xf32>
    %46 = vector.shape_cast %45 : vector<8xf32> to vector<8x1xf32>
    %47 = tpu.reciprocal %46 {approx = true} : vector<8x1xf32> -> vector<8x1xf32>
    %48 = vector.broadcast %47 : vector<8x1xf32> to vector<8x8xf32>
    %49 = arith.mulf %44, %48 : vector<8x8xf32>
    %cst_25 = arith.constant dense<0.000000e+00> : vector<8x8xf32>
    %50 = tpu.matmul %49, %36, %cst_25 {dimension_numbers = #tpu.dot_dimension_numbers<[1], [0], [0], [1], [0, 0, 1, 1], [], []>} : vector<8x8xf32>, vector<8x8xf32>, vector<8x8xf32> -> vector<8x8xf32>
    %51 = vector.extract_strided_slice %7 {offsets = [0, 16], sizes = [8, 8], strides = [1, 1]} : vector<8x32xf32> to vector<8x8xf32>
    %52 = vector.extract_strided_slice %9 {offsets = [0, 16], sizes = [8, 8], strides = [1, 1]} : vector<8x32xf32> to vector<8x8xf32>
    %53 = vector.extract_strided_slice %11 {offsets = [0, 16], sizes = [8, 8], strides = [1, 1]} : vector<8x32xf32> to vector<8x8xf32>
    %cst_26 = arith.constant dense<0.000000e+00> : vector<8x8xf32>
    %54 = tpu.matmul %51, %52, %cst_26 {dimension_numbers = #tpu.dot_dimension_numbers<[1], [1], [0], [0], [0, 0, 1, 0], [], []>} : vector<8x8xf32>, vector<8x8xf32>, vector<8x8xf32> -> vector<8x8xf32>
    %cst_27 = arith.constant -1.000000e+06 : f32
    %55 = vector.broadcast %cst_27 : f32 to vector<8x8xf32>
    %56 = arith.select %16, %54, %55 : vector<8x8xi1>, vector<8x8xf32>
    %cst_28 = arith.constant dense<0xFF800000> : vector<8xf32>
    %57 = vector.multi_reduction <maximumf>, %56, %cst_28 [1] : vector<8x8xf32> to vector<8xf32>
    %58 = vector.shape_cast %57 : vector<8xf32> to vector<8x1xf32>
    %59 = vector.broadcast %58 : vector<8x1xf32> to vector<8x8xf32>
    %60 = arith.subf %56, %59 : vector<8x8xf32>
    %61 = math.exp %60 : vector<8x8xf32>
    %cst_29 = arith.constant dense<0.000000e+00> : vector<8xf32>
    %62 = vector.multi_reduction <add>, %61, %cst_29 [1] : vector<8x8xf32> to vector<8xf32>
    %63 = vector.shape_cast %62 : vector<8xf32> to vector<8x1xf32>
    %64 = tpu.reciprocal %63 {approx = true} : vector<8x1xf32> -> vector<8x1xf32>
    %65 = vector.broadcast %64 : vector<8x1xf32> to vector<8x8xf32>
    %66 = arith.mulf %61, %65 : vector<8x8xf32>
    %cst_30 = arith.constant dense<0.000000e+00> : vector<8x8xf32>
    %67 = tpu.matmul %66, %53, %cst_30 {dimension_numbers = #tpu.dot_dimension_numbers<[1], [0], [0], [1], [0, 0, 1, 1], [], []>} : vector<8x8xf32>, vector<8x8xf32>, vector<8x8xf32> -> vector<8x8xf32>
    %68 = vector.extract_strided_slice %7 {offsets = [0, 24], sizes = [8, 8], strides = [1, 1]} : vector<8x32xf32> to vector<8x8xf32>
    %69 = vector.extract_strided_slice %9 {offsets = [0, 24], sizes = [8, 8], strides = [1, 1]} : vector<8x32xf32> to vector<8x8xf32>
    %70 = vector.extract_strided_slice %11 {offsets = [0, 24], sizes = [8, 8], strides = [1, 1]} : vector<8x32xf32> to vector<8x8xf32>
    %cst_31 = arith.constant dense<0.000000e+00> : vector<8x8xf32>
    %71 = tpu.matmul %68, %69, %cst_31 {dimension_numbers = #tpu.dot_dimension_numbers<[1], [1], [0], [0], [0, 0, 1, 0], [], []>} : vector<8x8xf32>, vector<8x8xf32>, vector<8x8xf32> -> vector<8x8xf32>
    %cst_32 = arith.constant -1.000000e+06 : f32
    %72 = vector.broadcast %cst_32 : f32 to vector<8x8xf32>
    %73 = arith.select %16, %71, %72 : vector<8x8xi1>, vector<8x8xf32>
    %cst_33 = arith.constant dense<0xFF800000> : vector<8xf32>
    %74 = vector.multi_reduction <maximumf>, %73, %cst_33 [1] : vector<8x8xf32> to vector<8xf32>
    %75 = vector.shape_cast %74 : vector<8xf32> to vector<8x1xf32>
    %76 = vector.broadcast %75 : vector<8x1xf32> to vector<8x8xf32>
    %77 = arith.subf %73, %76 : vector<8x8xf32>
    %78 = math.exp %77 : vector<8x8xf32>
    %cst_34 = arith.constant dense<0.000000e+00> : vector<8xf32>
    %79 = vector.multi_reduction <add>, %78, %cst_34 [1] : vector<8x8xf32> to vector<8xf32>
    %80 = vector.shape_cast %79 : vector<8xf32> to vector<8x1xf32>
    %81 = tpu.reciprocal %80 {approx = true} : vector<8x1xf32> -> vector<8x1xf32>
    %82 = vector.broadcast %81 : vector<8x1xf32> to vector<8x8xf32>
    %83 = arith.mulf %78, %82 : vector<8x8xf32>
    %cst_35 = arith.constant dense<0.000000e+00> : vector<8x8xf32>
    %84 = tpu.matmul %83, %70, %cst_35 {dimension_numbers = #tpu.dot_dimension_numbers<[1], [0], [0], [1], [0, 0, 1, 1], [], []>} : vector<8x8xf32>, vector<8x8xf32>, vector<8x8xf32> -> vector<8x8xf32>
    %85 = tpu.concatenate %33, %50, %67, %84 in 1 : vector<8x8xf32>, vector<8x8xf32>, vector<8x8xf32>, vector<8x8xf32> -> vector<8x32xf32>
    %c0_36 = arith.constant 0 : index
    %c0_37 = arith.constant 0 : index
    %86 = vector.load %arg9[%c0_36, %c0_37] : memref<32x32xf32, #tpu.memory_space<vmem>>, vector<32x32xf32>
    %cst_38 = arith.constant dense<0.000000e+00> : vector<8x32xf32>
    %87 = tpu.matmul %85, %86, %cst_38 {dimension_numbers = #tpu.dot_dimension_numbers<[1], [0], [0], [1], [0, 0, 1, 1], [], []>} : vector<8x32xf32>, vector<32x32xf32>, vector<8x32xf32> -> vector<8x32xf32>
    %c0_39 = arith.constant 0 : index
    %c0_40 = arith.constant 0 : index
    %c0_41 = arith.constant 0 : index
    %88 = vector.load %arg10[%c0_39, %c0_40, %c0_41] : memref<1x8x32xf32, #tpu.memory_space<vmem>>, vector<1x8x32xf32>
    %89 = vector.shape_cast %88 : vector<1x8x32xf32> to vector<8x32xf32>
    %90 = vector.shape_cast %87 : vector<8x32xf32> to vector<1x8x32xf32>
    tpu.vector_store %arg10[%c0_39, %c0_40, %c0_41], %90 {strides = array<i32>} : memref<1x8x32xf32, #tpu.memory_space<vmem>>, vector<1x8x32xf32>,
    return
  }
  func.func @transform_0(%arg0: i32, %arg1: i32, %arg2: memref<2xi32, #tpu.memory_space<smem>>) -> (i32, i32, i32) {
    %c0_i32 = arith.constant 0 : i32
    %c0_i32_0 = arith.constant 0 : i32
    return %arg0, %arg1, %c0_i32 : i32, i32, i32
  }
  func.func @transform_1(%arg0: i32, %arg1: i32, %arg2: memref<2xi32, #tpu.memory_space<smem>>) -> (i32, i32, i32) {
    %c0_i32 = arith.constant 0 : i32
    %c0_i32_0 = arith.constant 0 : i32
    %c0_i32_1 = arith.constant 0 : i32
    return %arg0, %c0_i32, %c0_i32_0 : i32, i32, i32
  }
  func.func @transform_2(%arg0: i32, %arg1: i32, %arg2: memref<2xi32, #tpu.memory_space<smem>>) -> (i32, i32, i32) {
    %c0_i32 = arith.constant 0 : i32
    %c0_i32_0 = arith.constant 0 : i32
    %c0_i32_1 = arith.constant 0 : i32
    return %arg0, %c0_i32, %c0_i32_0 : i32, i32, i32
  }
  func.func @transform_3(%arg0: i32, %arg1: i32, %arg2: memref<2xi32, #tpu.memory_space<smem>>) -> (i32, i32) {
    %c0_i32 = arith.constant 0 : i32
    %c0_i32_0 = arith.constant 0 : i32
    %c0_i32_1 = arith.constant 0 : i32
    return %c0_i32, %c0_i32_0 : i32, i32
  }
  func.func @transform_4(%arg0: i32, %arg1: i32, %arg2: memref<2xi32, #tpu.memory_space<smem>>) -> (i32, i32) {
    %c0_i32 = arith.constant 0 : i32
    %c0_i32_0 = arith.constant 0 : i32
    %c0_i32_1 = arith.constant 0 : i32
    return %c0_i32, %c0_i32_0 : i32, i32
  }
  func.func @transform_5(%arg0: i32, %arg1: i32, %arg2: memref<2xi32, #tpu.memory_space<smem>>) -> (i32, i32) {
    %c0_i32 = arith.constant 0 : i32
    %c0_i32_0 = arith.constant 0 : i32
    %c0_i32_1 = arith.constant 0 : i32
    return %c0_i32, %c0_i32_0 : i32, i32
  }
  func.func @transform_6(%arg0: i32, %arg1: i32, %arg2: memref<2xi32, #tpu.memory_space<smem>>) -> (i32, i32) {
    %c0_i32 = arith.constant 0 : i32
    %c0_i32_0 = arith.constant 0 : i32
    %c0_i32_1 = arith.constant 0 : i32
    return %c0_i32, %c0_i32_0 : i32, i32
  }
  func.func @transform_7(%arg0: i32, %arg1: i32, %arg2: memref<2xi32, #tpu.memory_space<smem>>) -> (i32, i32, i32) {
    %c0_i32 = arith.constant 0 : i32
    %c0_i32_0 = arith.constant 0 : i32
    return %arg0, %arg1, %c0_i32 : i32, i32, i32
  }
}

</mosaic_0001>

<bundles_post_ra>
// kernel: tpu_custom_call.1
= control target key start
LH: loop header
LB: loop body
LE: loop exit
PB: predicated region body
PF: predicated region fallthrough
CT: control target
= control target key end

     0   :  { %s2817_s0 = inlined_call_operand.hbm [shape: s32[2], index: 0, kind: input, shape index: {}]   ;;  %s2818_s1 = inlined_call_operand.hbm [shape: f32[2,8,32], index: 1, kind: input, shape index: {}]   ;;  %s2819_s2 = inlined_call_operand.hbm [shape: f32[2,8,32], index: 2, kind: input, shape index: {}]   ;;  %s2820_s3 = inlined_call_operand.hbm [shape: f32[2,8,32], index: 3, kind: input, shape index: {}]   ;;  %s2821_s4 = inlined_call_operand.hbm [shape: f32[32,32], index: 4, kind: input, shape index: {}]   ;;  %s2822_s5 = inlined_call_operand.hbm [shape: f32[32,32], index: 5, kind: input, shape index: {}]   ;;  %s2823_s6 = inlined_call_operand.hbm [shape: f32[32,32], index: 6, kind: input, shape index: {}]   ;;  %s2824_s7 = inlined_call_operand.hbm [shape: f32[32,32], index: 7, kind: input, shape index: {}]   ;;  %s2825_s8 = inlined_call_operand.hbm [shape: f32[2,8,32], index: 8, kind: output, shape index: {}]  }
   0x1   :  { %2850 = sst [smem:[#allocation29_spill]] %s2819_s2  ;;  %s1945_s29 = scalar_lea.hbm %s2817_s0, 16 }
   0x2   :  { %2851 = sst [smem:[#allocation30_spill]] %s2821_s4  ;;  %p1946_p0 = scmp.ne.s32.totalorder %s2817_s0, %s1945_s29 }
   0x3   :  { %2852 = sst [smem:[#allocation31_spill]] %s2823_s6  ;;  %p1949_p1 = scmp.lt.u32.totalorder %s1945_s29, %s2817_s0 }
   0x4   :  { %2853 = sst [smem:[#allocation32_spill]] %s2825_s8 }
   0x5   :  { %p1951_p2 = pnand %p1949_p1, %p1946_p0 }
   0x7   :  { %1954 = shalt.err (!%p1951_p2)  }
   0x8   :  { %s2255_s12 = smov [#allocation3]  }
   0x9   :  { %14 = dma.hbm_to_smem %s2817_s0, 16, %s2255_s12, [#allocation2] }
   0xa   :  { %2209 = dma.done.wait [#allocation2], 16 }
   0xb   :  { %2210 = vsyncadd [#allocation2], 4294967280 }
   0xc   :  { %16 = sfence }
   0xd   :  { %17 = vsyncpa [#allocation5], 0 }
   0xe   :  { %19 = vsyncpa [#allocation5 + $0x1], 0 }
   0xf   :  { %20 = vsyncpa [#allocation8], 0 }
  0x10   :  { %22 = vsyncpa [#allocation8 + $0x1], 0 }
  0x11   :  { %23 = vsyncpa [#allocation11], 0 }
  0x12   :  { %24 = vsyncpa [#allocation14], 0 }
  0x13   :  { %25 = vsyncpa [#allocation6], 0 }
  0x14   :  { %27 = vsyncpa [#allocation6 + $0x1], 0  ;;  %s2332_s15 = smov 0   ;;  %s2334_s16 = smov 0  }
  0x15   :  { %s2336_s17 = smov 0   ;;  %s2338_s18 = smov 0  }
  0x16   :  { %s2340_s0 = smov 0   ;;  %s2342_s19 = smov 0  }
  0x17 LB: > { %2854 = sst [smem:[#allocation23_spill]] %s2233_s15  ;;  %s2363_s20 = sadd.s32 4294967295, %s2253_s19   ;;  %s2253_s19 = sphi %s2342_s19, %s33_s19   ;;  %s2249_s0 = sphi %s2340_s0, %s2897_s0   ;;  %s2245_s18 = sphi %s2338_s18, %s2896_s18   ;;  %s2241_s17 = sphi %s2336_s17, %s2900_s17   ;;  %s2237_s16 = sphi %s2334_s16, %s2899_s16   ;;  %s2233_s15 = sphi %s2332_s15, %s2898_s15  }
  0x18   : > { %2855 = sst [smem:[#allocation24_spill]] %s2249_s0  ;;  %p1619_p3 = scmp.ge.s32.totalorder %s2253_s19, 1 }
  0x19   : > { %2856 = sst [smem:[#allocation25_spill]] %s2253_s19  ;;  %p2835_p4 = scmp.eq.s32.totalorder %s2363_s20, 0 }
  0x1a   : > { %p242_p5 = scmp.lt.s32.totalorder %s2253_s19, 3  ;;  %s2256_s22 = smov [#allocation10]  }
  0x1b   : > { %s254_s23 = sshll.u32 %s2256_s22, 4  ;;  %s2257_s25 = smov [#allocation13]   ;;  %s2372_s23 = int_to_ptr.vmem [resolvable:$true] %s254_s23 }
  0x1c   : > { %p2368_p6 = pnand %p1619_p3, %p242_p5  ;;  %s280_s26 = sshll.u32 %s2257_s25, 4  ;;  %s2383_s26 = int_to_ptr.vmem [resolvable:$true] %s280_s26 }
  0x1d   : > { %s2859_s4 = sld [smem:[#allocation30_spill]] }
  0x1e   : > { %s2857_s21 = scalar_select %p2368_p6, 1, 0 }
  0x1f   : > { %p1828_p7 = pneg %p2368_p6 }
  0x21   : > { %p2379_p9 = pnand %p1828_p7, %p2835_p4 }
  0x23   : > { %s2858_s24 = scalar_select %p2379_p9, 1, 0 }
  0x24   : > { %s1955_s29 = scalar_lea.hbm %s2859_s4, 512  ;;  %p2393_p11 = pneg %p2379_p9 }
  0x25   : > { %p1956_p10 = scmp.ne.s32.totalorder %s2859_s4, %s1955_s29  ;;  %p1962_p0 = scmp.lt.u32.totalorder %s1955_s29, %s2859_s4 }
  0x26   : > { %s2860_s10 = scalar_select %p2393_p11, 1, 0 }
  0x27   : > { %p1958_p12 = pnand %p2393_p11, %p1956_p10 }
  0x29   : > { %p1959_p13 = pneg %p1958_p12 }
  0x2b   : > { %p1964_p1 = pnand %p1962_p0, %p1959_p13 }
  0x2d   : > { %1967 = shalt.err (!%p1964_p1)
}
  0x2e   : > { %s1968_s13 = scalar_lea.vmem %s2372_s23, 512  ;;  %p1976_p7 = scmp.lt.s32.totalorder %s2372_s23, %s2372_s23 }
  0x2f   : > { %p1969_p2 = scmp.ne.s32.totalorder %s2372_s23, %s1968_s13  ;;  %p1977_p8 = scmp.lt.s32.totalorder %s1968_s13, %s1968_s13 }
  0x31   : > { %p1971_p3 = pnand %p1969_p2, %p2393_p11  ;;  %p1978_p10 = por %p1977_p8, %p1976_p7 }
  0x33   : > { %p1972_p5 = pneg %p1971_p3 }
  0x35   : > { %p1979_p12 = pnand %p1978_p10, %p1972_p5 }
  0x37   : > { %1982 = shalt.err (!%p1979_p12)
}
  0x38   : > { %s2826_s14 = smov 128   ;;  %s2828_s22 = smov 8  }
  0x39   : > { %1831 = dma.hbm_to_vmem [thread:$0]  (!%p2379_p9), %s2859_s4, 512, %s2372_s23, [#allocation11], %s2826_s14, %s2826_s14, %s2828_s22  }
  0x3a   : > { %s2861_s6 = sld [smem:[#allocation31_spill]] }
  0x40   : > { %s1983_s30 = scalar_lea.hbm %s2861_s6, 512 }
  0x41   : > { %p1984_p8 = scmp.ne.s32.totalorder %s2861_s6, %s1983_s30  ;;  %p1990_p1 = scmp.lt.u32.totalorder %s1983_s30, %s2861_s6 }
  0x43   : > { %p1986_p13 = pnand %p1984_p8, %p2393_p11 }
  0x45   : > { %p1987_p0 = pneg %p1986_p13 }
  0x47   : > { %p1992_p2 = pnand %p1990_p1, %p1987_p0 }
  0x49   : > { %1995 = shalt.err (!%p1992_p2)
}
  0x4a   : > { %s1996_s23 = scalar_lea.vmem %s2383_s26, 512  ;;  %p2004_p10 = scmp.lt.s32.totalorder %s2383_s26, %s2383_s26 }
  0x4b   : > { %p1997_p3 = scmp.ne.s32.totalorder %s2383_s26, %s1996_s23  ;;  %p2005_p12 = scmp.lt.s32.totalorder %s1996_s23, %s1996_s23 }
  0x4d   : > { %p1999_p5 = pnand %p1997_p3, %p2393_p11  ;;  %p2006_p8 = por %p2005_p12, %p2004_p10 }
  0x4f   : > { %p2000_p7 = pneg %p1999_p5 }
  0x51   : > { %p2007_p13 = pnand %p2006_p8, %p2000_p7 }
  0x53   : > { %2010 = shalt.err (!%p2007_p13)
}
  0x54   : > { %1837 = dma.hbm_to_vmem [thread:$0]  (!%p2379_p9), %s2861_s6, 512, %s2383_s26, [#allocation14], %s2826_s14, %s2826_s14, %s2828_s22  }
  0x55   : > { %s1618_s28 = sadd.s32 4294967294, %s2253_s19   ;;  %s45_s29 = sadd.s32 1, %s2249_s0 }
  0x56   : > { %p47_p0 = scmp.ge.s32.totalorder %s45_s29, 2  ;;  %s54_s30 = sadd.s32 1, %s2241_s17 }
  0x57   : > { %p61_p1 = scmp.ne.s32.totalorder %s2241_s17, %s2237_s16  ;;  %p62_p2 = scmp.eq.s32.totalorder %s2253_s19, 0 }
  0x58   : > { %s2902_s29 = smov (%p47_p0, %s45_s29), 0  ;;  %p67_p5 = scmp.ne.s32.totalorder %s2237_s16, %s2233_s15 }
  0x59   : > { %2862 = sst [smem:[#allocation26_spill]] %s2902_s29  ;;  %p2451_p3 = por %p62_p2, %p61_p1 }
  0x5a   : > { %s49_s26 = ssub.s32 %s2249_s0, %s2902_s29  ;;  %p229_p7 = scmp.eq.s32.totalorder %s2363_s20, 1 }
  0x5b   : > { %p52_p10 = scmp.eq.s32.totalorder %s49_s26, 0  ;;  %p2462_p12 = por %p2835_p4, %p67_p5 }
  0x5c   : > { %p2466_p8 = por %p229_p7, %p61_p1  ;;  %p235_p13 = scmp.eq.s32.totalorder %s1618_s28, 1 }
  0x5d   : > { %s2864_s11 = scalar_select %p2462_p12, 1, 0 }
  0x5e   : > { %s2865_s12 = scalar_select %p2466_p8, 1, 0 }
  0x5f   : > { %s2471_s13 = scalar_select %p52_p10, %s2241_s17, %s54_s30  }
  0x60   : > { %p2473_p0 = por %p235_p13, %p67_p5  ;;  %p1859_p2 = scmp.lt.s32.totalorder %s2253_s19, 2 }
  0x61   : > { %2866 = sst [smem:[#allocation27_spill]] %s2471_s13  ;;  %s2830_s25 = sand.u32 1, %s2241_s17  }
  0x62   : > { %s2867_s23 = scalar_select %p2473_p0, 1, 0 }
  0x63   : > { %s2480_s27 = sshll.u32 %s2249_s0, 7  ;;  %s2484_s26 = sshll.u32 %s2830_s25, 3 }
  0x64   : > { %2868 = sst [smem:[#allocation28_spill]] %s2867_s23  ;;  %p2488_p1 = pnand %p1859_p2, %p2451_p3 }
  0x65   : > { %s326_s28 = sand.u32 1, %s2253_s19   ;;  %s2870_s2 = sld [smem:[#allocation29_spill]] }
  0x66   : > { %s2869_s14 = scalar_select %p2488_p1, 1, 0 }
  0x67   : > { %s330_s6 = scalar_lea.vmem [#allocation7], %s2484_s26  ;;  %s2502_s9 = scalar_lea.sflag [#allocation8], %s326_s28 }
  0x68   : > { %s337_s25 = sshll.u32 %s330_s6, 4  ;;  %p2508_p5 = pneg %p2488_p1  ;;  %s2500_s25 = int_to_ptr.vmem [resolvable:$true] %s337_s25 }
  0x6a   : > { %s2871_s0 = scalar_select %p2508_p5, 1, 0 }
  0x6b   : > { %s2497_s4 = scalar_lea.hbm %s2870_s2, %s2480_s27  ;;  %s2016_s13 = scalar_lea.hbm %s2870_s2, 256 }
  0x6c   : > { %s2011_s29 = scalar_lea.hbm %s2497_s4, 128  ;;  %p2017_p13 = scmp.lt.u32.totalorder %s2497_s4, %s2870_s2 }
  0x6d   : > { %p2012_p3 = scmp.ne.s32.totalorder %s2497_s4, %s2011_s29  ;;  %p2018_p2 = scmp.lt.u32.totalorder %s2016_s13, %s2011_s29 }
  0x6e   : > { %p2020_p0 = scmp.lt.u32.totalorder %s2011_s29, %s2497_s4 }
  0x6f   : > { %p2014_p7 = pnand %p2508_p5, %p2012_p3  ;;  %p2019_p4 = por %p2018_p2, %p2017_p13 }
  0x71   : > { %p2015_p10 = pneg %p2014_p7  ;;  %p2021_p8 = por %p2020_p0, %p2019_p4 }
  0x73   : > { %p2022_p12 = pnand %p2021_p8, %p2015_p10 }
  0x75   : > { %2025 = shalt.err (!%p2022_p12)
}
  0x76   : > { %s2026_s28 = scalar_lea.vmem %s2500_s25, 128  ;;  %s2260_s22 = smov [#allocation7]  }
  0x77   : > { %p2027_p3 = scmp.ne.s32.totalorder %s2500_s25, %s2026_s28  ;;  %s2031_s30 = sshll.u32 %s2260_s22, 4  ;;  %s2032_s30 = int_to_ptr.vmem [resolvable:$false] %s2031_s30 }
  0x78   : > { %s2033_s19 = scalar_lea.vmem %s2032_s30, 256  ;;  %p2034_p9 = scmp.lt.s32.totalorder %s2500_s25, %s2032_s30 }
  0x79   : > { %p2029_p7 = pnand %p2027_p3, %p2508_p5  ;;  %p2035_p11 = scmp.lt.s32.totalorder %s2033_s19, %s2026_s28 }
  0x7b   : > { %p2030_p6 = pneg %p2029_p7  ;;  %p2036_p13 = por %p2035_p11, %p2034_p9 }
  0x7d   : > { %p2037_p2 = pnand %p2036_p13, %p2030_p6 }
  0x7f   : > { %2040 = shalt.err (!%p2037_p2)
}
  0x80   : > { %1847 = dma.hbm_to_vmem [thread:$0]  (!%p2488_p1), %s2497_s4, 128, %s2500_s25, %s2502_s9  }
  0x81   : > { %s2261_s29 = smov [#allocation12]   ;;  %s2262_s6 = smov [#allocation15]  }
  0x82   : > { %s267_s13 = sshll.u32 %s2261_s29, 4  ;;  %s293_s2 = sshll.u32 %s2262_s6, 4  ;;  %s268_s13 = int_to_ptr.vmem [resolvable:$true] %s267_s13  ;;  %s294_s2 = int_to_ptr.vmem [resolvable:$true] %s293_s2 }
  0x83   : > { %s2041_s30 = scalar_lea.hbm %s2822_s5, 512  ;;  %p2872_p6 = scmp.ne.s32.totalorder %s2860_s10, 0 }
  0x84   : > { %p2042_p4 = scmp.ne.s32.totalorder %s2822_s5, %s2041_s30  ;;  %p2048_p12 = scmp.lt.u32.totalorder %s2041_s30, %s2822_s5 }
  0x86   : > { %p2044_p9 = pnand %p2042_p4, %p2872_p6 }
  0x88   : > { %p2045_p11 = pneg %p2044_p9 }
  0x8a   : > { %p2050_p8 = pnand %p2048_p12, %p2045_p11 }
  0x8c   : > { %2053 = shalt.err (!%p2050_p8)
}
  0x8d   : > { %s2054_s4 = scalar_lea.vmem %s268_s13, 512  ;;  %p2062_p7 = scmp.lt.s32.totalorder %s268_s13, %s268_s13 }
  0x8e   : > { %p2055_p0 = scmp.ne.s32.totalorder %s268_s13, %s2054_s4  ;;  %p2063_p13 = scmp.lt.s32.totalorder %s2054_s4, %s2054_s4 }
  0x90   : > { %p2057_p10 = pnand %p2055_p0, %p2872_p6  ;;  %p2064_p2 = por %p2063_p13, %p2062_p7 }
  0x92   : > { %p2058_p3 = pneg %p2057_p10 }
  0x94   : > { %p2065_p1 = pnand %p2064_p2, %p2058_p3 }
  0x96   : > { %2068 = shalt.err (!%p2065_p1)
}
  0x97   : > { %p2873_p4 = scmp.ne.s32.totalorder %s2858_s24, 0  ;;  %s2874_s23 = smov 8  }
  0x98   : > { %s2875_s25 = smov 128   ;;  %s2069_s22 = scalar_lea.hbm %s2824_s7, 512 }
  0x99   : > { %1834 = dma.hbm_to_vmem [thread:$0]  (!%p2873_p4), %s2822_s5, 512, %s268_s13, [#allocation11], %s2875_s25, %s2875_s25, %s2874_s23  }
  0x9a   : > { %p2070_p9 = scmp.ne.s32.totalorder %s2824_s7, %s2069_s22  ;;  %p2076_p12 = scmp.lt.u32.totalorder %s2069_s22, %s2824_s7 }
  0x9c   : > { %p2072_p1 = pnand %p2070_p9, %p2872_p6 }
  0x9e   : > { %p2073_p11 = pneg %p2072_p1 }
  0xa0   : > { %p2078_p8 = pnand %p2076_p12, %p2073_p11 }
  0xa2   : > { %2081 = shalt.err (!%p2078_p8)
}
  0xa3   : > { %s2082_s8 = scalar_lea.vmem %s294_s2, 512  ;;  %p2090_p7 = scmp.lt.s32.totalorder %s294_s2, %s294_s2 }
  0xa4   : > { %p2083_p0 = scmp.ne.s32.totalorder %s294_s2, %s2082_s8  ;;  %p2091_p13 = scmp.lt.s32.totalorder %s2082_s8, %s2082_s8 }
  0xa6   : > { %p2085_p10 = pnand %p2083_p0, %p2872_p6  ;;  %p2092_p2 = por %p2091_p13, %p2090_p7 }
  0xa8   : > { %p2086_p3 = pneg %p2085_p10 }
  0xaa   : > { %p2093_p5 = pnand %p2092_p2, %p2086_p3 }
  0xac   : > { %2096 = shalt.err (!%p2093_p5)
}
  0xad   : > { %1840 = dma.hbm_to_vmem [thread:$0]  (!%p2873_p4), %s2824_s7, 512, %s294_s2, [#allocation14], %s2875_s25, %s2875_s25, %s2874_s23  }
  0xae   : > { %s2578_s6 = scalar_lea.hbm %s2818_s1, %s2480_s27  ;;  %s311_s24 = scalar_lea.vmem [#allocation4], %s2484_s26 }
  0xaf   : > { %s319_s22 = sshll.u32 %s311_s24, 4  ;;  %s2587_s19 = scalar_lea.hbm %s2820_s3, %s2480_s27  ;;  %s2581_s22 = int_to_ptr.vmem [resolvable:$true] %s319_s22 }
  0xb0   : > { %s2876_s4 = sand.u32 1, %s2241_s17   ;;  %s2097_s23 = scalar_lea.hbm %s2578_s6, 128 }
  0xb1   : > { %s308_s2 = scalar_lea.sflag [#allocation5], %s2876_s4  ;;  %p2098_p5 = scmp.ne.s32.totalorder %s2578_s6, %s2097_s23 }
  0xb2   : > { %p2877_p6 = scmp.ne.s32.totalorder %s2871_s0, 0  ;;  %s2102_s13 = scalar_lea.hbm %s2818_s1, 256 }
  0xb3   : > { %p2103_p1 = scmp.lt.u32.totalorder %s2578_s6, %s2818_s1  ;;  %p2104_p11 = scmp.lt.u32.totalorder %s2102_s13, %s2097_s23 }
  0xb4   : > { %p2100_p4 = pnand %p2098_p5, %p2877_p6  ;;  %p2106_p8 = scmp.lt.u32.totalorder %s2097_s23, %s2578_s6 }
  0xb5   : > { %p2105_p12 = por %p2104_p11, %p2103_p1 }
  0xb6   : > { %p2101_p9 = pneg %p2100_p4 }
  0xb7   : > { %p2107_p0 = por %p2106_p8, %p2105_p12 }
  0xb9   : > { %p2108_p10 = pnand %p2107_p0, %p2101_p9 }
  0xbb   : > { %2111 = shalt.err (!%p2108_p10)
}
  0xbc   : > { %s2112_s27 = scalar_lea.vmem %s2581_s22, 128  ;;  %s2263_s29 = smov [#allocation4]  }
  0xbd   : > { %p2113_p3 = scmp.ne.s32.totalorder %s2581_s22, %s2112_s27  ;;  %s2117_s24 = sshll.u32 %s2263_s29, 4  ;;  %s2118_s24 = int_to_ptr.vmem [resolvable:$false] %s2117_s24 }
  0xbe   : > { %s2119_s30 = scalar_lea.vmem %s2118_s24, 256  ;;  %p2120_p2 = scmp.lt.s32.totalorder %s2581_s22, %s2118_s24 }
  0xbf   : > { %p2115_p7 = pnand %p2113_p3, %p2877_p6  ;;  %p2121_p5 = scmp.lt.s32.totalorder %s2119_s30, %s2112_s27 }
  0xc1   : > { %p2116_p13 = pneg %p2115_p7  ;;  %p2122_p4 = por %p2121_p5, %p2120_p2 }
  0xc3   : > { %p2123_p1 = pnand %p2122_p4, %p2116_p13 }
  0xc5   : > { %2126 = shalt.err (!%p2123_p1)
}
  0xc6   : > { %p2878_p9 = scmp.ne.s32.totalorder %s2869_s14, 0  ;;  %s348_s28 = scalar_lea.vmem [#allocation9], %s2484_s26 }
  0xc7   : > { %s355_s4 = sshll.u32 %s348_s28, 4  ;;  %s2127_s23 = scalar_lea.hbm %s2587_s19, 128  ;;  %s356_s4 = int_to_ptr.vmem [resolvable:$true] %s355_s4 }
  0xc8   : > { %1844 = dma.hbm_to_vmem [thread:$0]  (!%p2878_p9), %s2578_s6, 128, %s2581_s22, %s308_s2  }
  0xc9   : > { %p2128_p11 = scmp.ne.s32.totalorder %s2587_s19, %s2127_s23  ;;  %s2132_s13 = scalar_lea.hbm %s2820_s3, 256 }
  0xca   : > { %p2133_p0 = scmp.lt.u32.totalorder %s2587_s19, %s2820_s3  ;;  %p2134_p10 = scmp.lt.u32.totalorder %s2132_s13, %s2127_s23 }
  0xcb   : > { %p2130_p12 = pnand %p2128_p11, %p2877_p6  ;;  %p2136_p7 = scmp.lt.u32.totalorder %s2127_s23, %s2587_s19 }
  0xcc   : > { %p2135_p3 = por %p2134_p10, %p2133_p0 }
  0xcd   : > { %p2131_p8 = pneg %p2130_p12 }
  0xce   : > { %p2137_p13 = por %p2136_p7, %p2135_p3 }
  0xd0   : > { %p2138_p2 = pnand %p2137_p13, %p2131_p8 }
  0xd2   : > { %2141 = shalt.err (!%p2138_p2)
}
  0xd3   : > { %s2142_s26 = scalar_lea.vmem %s356_s4, 128  ;;  %s2264_s6 = smov [#allocation9]  }
  0xd4   : > { %p2143_p5 = scmp.ne.s32.totalorder %s356_s4, %s2142_s26  ;;  %s2147_s22 = sshll.u32 %s2264_s6, 4  ;;  %s2148_s22 = int_to_ptr.vmem [resolvable:$false] %s2147_s22 }
  0xd5   : > { %s2149_s2 = scalar_lea.vmem %s2148_s22, 256  ;;  %p2150_p11 = scmp.lt.s32.totalorder %s356_s4, %s2148_s22 }
  0xd6   : > { %p2145_p4 = pnand %p2143_p5, %p2877_p6  ;;  %p2151_p12 = scmp.lt.s32.totalorder %s2149_s2, %s2142_s26 }
  0xd8   : > { %p2146_p1 = pneg %p2145_p4  ;;  %p2152_p9 = por %p2151_p12, %p2150_p11 }
  0xda   : > { %p2153_p0 = pnand %p2152_p9, %p2146_p1 }
  0xdc   : > { %2156 = shalt.err (!%p2153_p0)
}
  0xdd   : > { %p2879_p10 = scmp.ne.s32.totalorder %s2869_s14, 0  ;;  %p2880_p8 = scmp.ne.s32.totalorder %s2857_s21, 0 }
  0xde   : > { %s2634_s0 = sand.u32 (!%p2880_p8), 1, %s2237_s16   ;;  %p2881_p6 = scmp.ne.s32.totalorder (!%p2880_p8), %s2864_s11, 0 }
  0xdf   : > { %1850 = dma.hbm_to_vmem [thread:$0]  (!%p2879_p10), %s2587_s19, 128, %s356_s4, %s2502_s9  }
  0xe0   : > { %364 = sbr.rel (%p2880_p8) target bundleno = 2145 (0x861), region = 48  ;;  %s2637_s27 = sshll.u32 (!%p2880_p8), %s2634_s0, 3 }
  0xe1   : > { %s367_s29 = scalar_lea.sflag (!%p2880_p8), [#allocation5], %s2634_s0  ;;  %s370_s24 = scalar_lea.vmem (!%p2880_p8), [#allocation4], %s2637_s27 }
  0xe7   : > { %2212 = dma.done.wait (%p2881_p6), %s367_s29, 128  }
  0xe8   : > { %2214 = vsyncadd (%p2881_p6), %s367_s29, 4294967168  ;;  %s375_s21 = sand.u32 1, %s2363_s20   ;;  %s379_s9 = scalar_lea.vmem [#allocation7], %s2637_s27 }
  0xe9   : > { %s376_s14 = scalar_lea.sflag [#allocation8], %s375_s21 }
  0xea   : > { %2216 = dma.done.wait (%p2881_p6), %s376_s14, 256  }
  0xeb   : > { %2218 = vsyncadd (%p2881_p6), %s376_s14, 4294967040  ;;  %s388_s19 = scalar_lea.vmem [#allocation9], %s2637_s27  ;;  %p2882_p9 = scmp.eq.s32.totalorder %s2363_s20, 0 }
  0xed   : > { %2220 = dma.done.wait (%p2882_p9), [#allocation11], 1024   ;;  %p2883_p3 = pmov %p2882_p9 }
  0xef   : > { %2222 = vsyncadd (%p2883_p3), [#allocation11], 4294966272  ;;  %p2884_p7 = pmov %p2883_p3 }
  0xf0   : > { %p2885_p13 = pmov %p2883_p3 }
  0xf1   : > { %2224 = dma.done.wait (%p2884_p7), [#allocation14], 1024  }
  0xf2   : > { %2226 = vsyncadd (%p2885_p13), [#allocation14], 4294966272  ;;  %v2265_v0 = vmov 0.0|0.0   ;;  %vm2266_vm0 = vmmov 0   ;;  %v2267_v1 = vmov 0.0   ;;  %v526_v2 = vld [vmem:[#allocation12] sm:$0xff]  ;;  %v681_v27 = vlaneseq }
  0xf3   : > { %1786 = vmatprep.subr.bf16.mxu1 %v2265_v0  ;;  %1780 = vmatprep.subr.bf16.mxu0 %v2265_v0  ;;  %v527_v3 = vld [vmem:[#allocation12 + $0x8] sm:$0xff]  ;;  %v448_v4 = vld [vmem:[#allocation10] sm:$0xff]  ;;  %v528_v7 = vld [vmem:[#allocation12 + $0x10] sm:$0xff]  ;;  %vm452_vm1 = vcmask 261120   ;;  %vm685_vm2 = vcmask 64512   ;;  %s2268_s20 = smov 120  }
  0xf4   : > { %1715 = vmatprep.mubr.msk.f32.mxu1 %vm2266_vm0, %v2267_v1  ;;  %1704 = vmatprep.mubr.msk.f32.mxu0 %vm2266_vm0, %v2267_v1  ;;  %v1787_v5 = vpack.c.bf16 %v527_v3, %v526_v2  ;;  %v449_v6 = vld [vmem:[#allocation10 + $0x8] sm:$0xff]  ;;  %v529_v8 = vld [vmem:[#allocation12 + $0x18] sm:$0xff]  ;;  %v450_v10 = vld [vmem:[#allocation10 + $0x10] sm:$0xff]  ;;  %s2269_s11 = smov 112   ;;  %s2270_s30 = smov 104   ;;  %v682_v28 = vand.u32 127, %v681_v27 }
  0xf5   : > { %v1781_v9 = vpack.c.bf16 %v449_v6, %v448_v4  ;;  %v451_v11 = vld [vmem:[#allocation10 + $0x18] sm:$0xff]  ;;  %v1790_v12 = vpack.c.bf16 %v529_v8, %v528_v7  ;;  %v446_v14 = vld [vmem:[%s379_s9] sm:$0xff]  ;;  %v605_v22 = vld [vmem:[#allocation13 + $0x10] sm:$0xff]  ;;  %s680_s28 = sld [smem:[#allocation3 + %s2245_s18]]  ;;  %s2271_s4 = smov 8   ;;  %vm1359_vm4 = vcmask 130048  }
  0xf6   : > { %1788 = vmatpush3.bf16.msra.mxu1 %v1787_v5  ;;  %v1784_v13 = vpack.c.bf16 %v451_v11, %v450_v10  ;;  %v445_v15 = vld [vmem:[%s370_s24] sm:$0xff]  ;;  %v603_v20 = vld [vmem:[#allocation13] sm:$0xff]  ;;  %v604_v21 = vld [vmem:[#allocation13 + $0x8] sm:$0xff]  ;;  %s2272_s23 = smov 16   ;;  %s2273_s25 = smov 24   ;;  %vm1361_vm5 = vcmask 195584  }
  0xf7   : > { %1782 = vmatpush3.bf16.msra.mxu0 %v1781_v9  ;;  %1789 = vmatprep.subr.bf16.mxu1 %v2265_v0  ;;  %v1793_v23 = vpack.c.bf16 %v604_v21, %v603_v20  ;;  %v606_v24 = vld [vmem:[#allocation13 + $0x18] sm:$0xff]  ;;  %v1363_v30 = vld [vmem:[#allocation15] sm:$0xff]  ;;  %s1657_s8 = sshll.u32 %s2245_s18, 7  ;;  %s444_s13 = scalar_lea.vmem [#allocation16], %s2637_s27 }
  0xf8   : > { %1783 = vmatprep.subr.bf16.mxu0 %v2265_v0  ;;  %v1796_v25 = vpack.c.bf16 %v606_v24, %v605_v22  ;;  %v447_v26 = vld [vmem:[%s388_s19] sm:$0xff]  ;;  %s1456_s15 = sshll.u32 %s444_s13, 4  ;;  %s2888_s6 = sld [smem:[#allocation32_spill]]  ;;  %s2769_s15 = int_to_ptr.vmem [resolvable:$true] %s1456_s15 }
  0xf9   : > { %s1442_s2 = scalar_lea.sflag [#allocation6], %s2634_s0  ;;  %s2157_s29 = scalar_lea.vmem %s2769_s15, 128 }
  0xfa   : > { %1791 = vmatpush3.bf16.msra.mxu1 %v1790_v12  ;;  %p2158_p2 = scmp.ne.s32.totalorder %s2769_s15, %s2157_s29  ;;  %p2889_p5 = scmp.ne.s32.totalorder %s2865_s12, 0 }
  0xfb   : > { %1785 = vmatpush3.bf16.msra.mxu0 %v1784_v13  ;;  %1729 = vmatprep.subr.mxu1 %v2267_v1  ;;  %v683_v29 = vstv %s680_s28  ;;  %s2274_s18 = smov [#allocation16]  }
  0xfc   : > { %1792 = vmatprep.subr.bf16.mxu0 %v2265_v0  ;;  %vm2698_vm3 = vcmp.lt.s32.totalorder %v682_v28, %v683_v29  ;;  %p2159_p4 = pnand %p2158_p2, %p2889_p5  ;;  %s2161_s27 = sshll.u32 %s2274_s18, 4  ;;  %s2162_s27 = int_to_ptr.vmem [resolvable:$false] %s2161_s27 }
  0xfd   : > { %1716 = vmatmul.mubr.msk.f32.vlgmr.msra.gmra.mrb[0].mxu1 %vm452_vm1, %v446_v14  ;;  %s2163_s24 = scalar_lea.vmem %s2162_s27, 256  ;;  %p2164_p11 = scmp.lt.s32.totalorder %s2769_s15, %s2162_s27 }
  0xfe   : > { %1705 = vmatmul.mubr.msk.f32.vlgmr.msra.gmra.mrb[0].mxu0 %vm452_vm1, %v445_v15  ;;  %1731 = vmatprep.mubr.msk.f32.mxu1 %vm2266_vm0, %v2267_v1  ;;  %s2767_s22 = scalar_lea.hbm %s2888_s6, %s1657_s8  ;;  %p2160_p1 = pneg %p2159_p4 }
  0xff   : > { %1726 = vmatprep.mubr.msk.f32.mxu0 %vm2266_vm0, %v2267_v1  ;;  %1794 = vmatpush3.bf16.msra.mxu0 %v1793_v23  ;;  %p2165_p12 = scmp.lt.s32.totalorder %s2163_s24, %s2157_s29 }
 0x100   : > { %1795 = vmatprep.subr.bf16.mxu0 %v2265_v0 }
 0x101   : > { %p2166_p0 = por %p2165_p12, %p2164_p11 }
 0x103   : > { %1797 = vmatpush3.bf16.msra.mxu0 %v1796_v25  ;;  %p2167_p10 = pnand %p2166_p0, %p2160_p1 }
 0x104   : > { %1749 = vmatprep.subr.mxu0 %v2267_v1 }
 0x106   : > { %1727 = vmatmul.mubr.msk.f32.vlgmr.msra.gmra.mrb[2].mxu0 %vm452_vm1, %v447_v26 }
 0x107   : > { %1751 = vmatprep.mubr.msk.f32.mxu0 %vm2266_vm0, %v2267_v1 }
 0x1d0   : > { %v599_v16 = vpop.f32.mrb[0].mxu1 }
 0x1d1   : > { %849 = vrot.lane.b32.xlu1 %v599_v16, %s2268_s20  ;;  %v1717_v17 = vpop.f32.mrb[1].mxu1  ;;  %1730 = vmatpush3.xpose.msk.msra.mxu1 %vm685_vm2, %v599_v16  ;;  %v522_v18 = vpop.f32.mrb[0].mxu0 }
 0x1d2   : > { %v1706_v19 = vpop.f32.mrb[1].mxu0  ;;  %1734 = vmatprep.subr.mxu1 %v2267_v1 }
 0x1d4   : > { %1732 = vmatmul.mubr.msk.f32.vlgmr.msra.gmra.mrb[2].mxu1 %vm685_vm2, %v522_v18 }
 0x1d5   : > { %847 = vrot.lane.b32.xlu1 %v522_v18, %s2268_s20  ;;  %1736 = vmatprep.mubr.msk.f32.mxu1 %vm2266_vm0, %v2267_v1 }
 0x1d9   : > { %1014 = vrot.lane.b32.xlu1 %v522_v18, %s2269_s11  ;;  %v2706_v40 = vpop.f32.mrb[2].mxu0 }
 0x1da   : > { %v1728_v41 = vpop.f32.mrb[3].mxu0  ;;  %1735 = vmatpush3.msra.mxu1 %v2706_v40 }
 0x1db   : > { %1739 = vmatprep.subr.mxu1 %v2267_v1 }
 0x1dd   : > { %1182 = vrot.lane.b32.xlu1 %v599_v16, %s2270_s30 }
 0x1e1   : > { %1180 = vrot.lane.b32.xlu1 %v522_v18, %s2270_s30 }
 0x243   : > { %v850_v42 = vpop.permute.xlu1 %849 }
 0x247   : > { %v848_v43 = vpop.permute.xlu1 %847 }
 0x24b   : > { %v1015_v44 = vpop.permute.xlu1 %1014 }
 0x24f   : > { %v1183_v47 = vpop.permute.xlu1 %1182 }
 0x253   : > { %v1181_v49 = vpop.permute.xlu1 %1180 }
 0x2a7   : > { %v758_v31 = vpop.f32.mrb[2].mxu1 }
 0x2a8   : > { %v762_v32 = vsel %vm2698_vm3, %v758_v31, -1000000.0  ;;  %v1733_v33 = vpop.f32.mrb[3].mxu1  ;;  %v1364_v31 = vld [vmem:[#allocation15 + $0x8] sm:$0xff] }
 0x2a9   : > { %v763_v34 = vsel %vm685_vm2, %v762_v32, -inf  ;;  %v1365_v33 = vld [vmem:[#allocation15 + $0x10] sm:$0xff] }
 0x2aa   : > { %764 = vmax.xlane.f32.xlu0 %v763_v34  ;;  %v1366_v34 = vld [vmem:[#allocation15 + $0x18] sm:$0xff] }
 0x337   : > { %v765_v35 = vpop.xlane.xlu0 %764 }
 0x338   : > { %v766_v36 = vsub.f32 %v762_v32, %v765_v35  ;;  %v1799_v32 = vpack.c.bf16 %v1364_v31, %v1363_v30  ;;  %v1802_v35 = vpack.c.bf16 %v1366_v34, %v1365_v33 }
 0x33a   : > { %v767_v37 = vmul.f32 1.442695, %v766_v36 }
 0x33c   : > { %1929 = vpow2.f32 %v767_v37 }
 0x346   : > { %v1930_v38 = vpop.eup %1929 }
 0x347   : > { %v769_v39 = vsel %vm685_vm2, %v1930_v38, 0.0 }
 0x348   : > { %770 = vadd.xlane.f32.xlu0 %v769_v39 }
 0x35e   : > { %1016 = vrot.lane.b32.xlu0 %v599_v16, %s2269_s11 }
 0x3d5   : > { %v771_v45 = vpop.xlane.xlu0 %770 }
 0x3d6   : > { %1931 = vrcp.f32 %v771_v45 }
 0x3d9   : > { %v1017_v46 = vpop.permute.xlu0 %1016 }
 0x3da   : > { %1750 = vmatpush3.xpose.msk.msra.mxu0 %vm685_vm2, %v1017_v46 }
 0x3db   : > { %1759 = vmatprep.subr.mxu0 %v2267_v1 }
 0x3dd   : > { %1752 = vmatmul.mubr.msk.f32.vlgmr.msra.gmra.mrb[4].mxu0 %vm685_vm2, %v1015_v44 }
 0x3de   : > { %1760 = vmatpush3.xpose.msk.msra.mxu0 %vm685_vm2, %v1183_v47  ;;  %1761 = vmatprep.mubr.msk.f32.mxu0 %vm2266_vm0, %v2267_v1 }
 0x3df   : > { %1798 = vmatprep.subr.bf16.mxu0 %v2265_v0 }
 0x3e0   : > { %v1932_v48 = vpop.eup %1931 }
 0x3e1   : > { %v773_v50 = vmul.f32 %v1932_v48, %v1930_v38  ;;  %1762 = vmatmul.mubr.msk.f32.vlgmr.msra.gmra.mrb[6].mxu0 %vm685_vm2, %v1181_v49 }
 0x3e2   : > { %1777 = vmatprep.mubr.msk.f32.mxu0 %vm2266_vm0, %v2267_v1  ;;  %1800 = vmatpush3.bf16.msra.mxu0 %v1799_v32 }
 0x3e3   : > { %1737 = vmatmul.mubr.msk.f32.vlgmr.msra.gmra.mrb[4].mxu1 %vm685_vm2, %v773_v50  ;;  %1801 = vmatprep.subr.bf16.mxu0 %v2265_v0 }
 0x3e4   : > { %1740 = vmatpush3.xpose.msk.msra.mxu1 %vm685_vm2, %v850_v42  ;;  %1741 = vmatprep.mubr.msk.f32.mxu1 %vm2266_vm0, %v2267_v1 }
 0x3e5   : > { %1744 = vmatprep.subr.mxu1 %v2267_v1 }
 0x3e6   : > { %1803 = vmatpush3.bf16.msra.mxu0 %v1802_v35 }
 0x3e7   : > { %1742 = vmatmul.mubr.msk.f32.vlgmr.msra.gmra.mrb[6].mxu1 %vm685_vm2, %v848_v43 }
 0x3e8   : > { %1746 = vmatprep.mubr.msk.f32.mxu1 %vm2266_vm0, %v2267_v1 }
 0x4b0   : > { %v1088_v51 = vpop.f32.mrb[4].mxu0 }
 0x4b1   : > { %v1092_v52 = vsel %vm2698_vm3, %v1088_v51, -1000000.0  ;;  %v1753_v53 = vpop.f32.mrb[5].mxu0 }
 0x4b2   : > { %v1093_v54 = vsel %vm685_vm2, %v1092_v52, -inf }
 0x4b3   : > { %1094 = vmax.xlane.f32.xlu0 %v1093_v54 }
 0x4b4   : > { %v1254_v55 = vpop.f32.mrb[6].mxu0 }
 0x4b5   : > { %v1763_v56 = vpop.f32.mrb[7].mxu0  ;;  %v1258_v63 = vsel %vm2698_vm3, %v1254_v55, -1000000.0 }
 0x4b6   : > { %v2732_v57 = vpop.f32.mrb[4].mxu1  ;;  %v1259_v2 = vsel %vm685_vm2, %v1258_v63, -inf }
 0x4b7   : > { %v1738_v58 = vpop.f32.mrb[5].mxu1 }
 0x4ba   : > { %v921_v59 = vpop.f32.mrb[6].mxu1 }
 0x4bb   : > { %v925_v60 = vsel %vm2698_vm3, %v921_v59, -1000000.0  ;;  %v1743_v61 = vpop.f32.mrb[7].mxu1 }
 0x4bc   : > { %v926_v62 = vsel %vm685_vm2, %v925_v60, -inf }
 0x4bd   : > { %927 = vmax.xlane.f32.xlu1 %v926_v62 }
 0x4c1   : > { %1260 = vmax.xlane.f32.xlu1 %v1259_v2 }
 0x540   : > { %v1095_v3 = vpop.xlane.xlu0 %1094 }
 0x541   : > { %v1096_v4 = vsub.f32 %v1092_v52, %v1095_v3 }
 0x543   : > { %v1097_v5 = vmul.f32 1.442695, %v1096_v4 }
 0x545   : > { %1933 = vpow2.f32 %v1097_v5 }
 0x54a   : > { %v928_v6 = vpop.xlane.xlu1 %927 }
 0x54b   : > { %v929_v14 = vsub.f32 %v925_v60, %v928_v6 }
 0x54d   : > { %v930_v15 = vmul.f32 1.442695, %v929_v14 }
 0x54e   : > { %v1261_v7 = vpop.xlane.xlu1 %1260 }
 0x54f   : > { %v1934_v8 = vpop.eup %1933  ;;  %v1262_v9 = vsub.f32 %v1258_v63, %v1261_v7 }
 0x550   : > { %v1099_v10 = vsel %vm685_vm2, %v1934_v8, 0.0 }
 0x551   : > { %v1263_v11 = vmul.f32 1.442695, %v1262_v9  ;;  %1100 = vadd.xlane.f32.xlu0 %v1099_v10 }
 0x553   : > { %1935 = vpow2.f32 %v1263_v11 }
 0x554   : > { %1937 = vpow2.f32 %v930_v15 }
 0x55d   : > { %v1936_v12 = vpop.eup %1935 }
 0x55e   : > { %v1265_v13 = vsel %vm685_vm2, %v1936_v12, 0.0  ;;  %v1938_v16 = vpop.eup %1937 }
 0x55f   : > { %1266 = vadd.xlane.f32.xlu1 %v1265_v13  ;;  %v932_v17 = vsel %vm685_vm2, %v1938_v16, 0.0 }
 0x567   : > { %938 = vrot.lane.b32.xlu0 %v2706_v40, %s2268_s20 }
 0x570   : > { %1104 = vrot.lane.b32.xlu1 %v2706_v40, %s2269_s11 }
 0x594   : > { %933 = vadd.xlane.f32.xlu1 %v932_v17 }
 0x5a5   : > { %1270 = vrot.lane.b32.xlu1 %v2706_v40, %s2270_s30 }
 0x5de   : > { %v1101_v18 = vpop.xlane.xlu0 %1100 }
 0x5e2   : > { %v939_v19 = vpop.permute.xlu0 %938 }
 0x5e3   : > { %1745 = vmatpush3.msra.mxu1 %v939_v19 }
 0x5e4   : > { %1754 = vmatprep.subr.mxu1 %v2267_v1 }
 0x5ec   : > { %v1267_v20 = vpop.xlane.xlu1 %1266 }
 0x5f0   : > { %v1105_v21 = vpop.permute.xlu1 %1104 }
 0x621   : > { %v934_v22 = vpop.xlane.xlu1 %933 }
 0x622   : > { %1939 = vrcp.f32 %v934_v22 }
 0x623   : > { %1941 = vrcp.f32 %v1101_v18 }
 0x624   : > { %1943 = vrcp.f32 %v1267_v20 }
 0x625   : > { %v1271_v28 = vpop.permute.xlu1 %1270 }
 0x62c   : > { %v1940_v23 = vpop.eup %1939 }
 0x62d   : > { %v936_v24 = vmul.f32 %v1940_v23, %v1938_v16  ;;  %v1942_v25 = vpop.eup %1941 }
 0x62e   : > { %v1103_v26 = vmul.f32 %v1942_v25, %v1934_v8  ;;  %v1944_v27 = vpop.eup %1943 }
 0x62f   : > { %1747 = vmatmul.mubr.msk.f32.vlgmr.msra.gmra.mrb[8].mxu1 %vm685_vm2, %v936_v24  ;;  %v1269_v29 = vmul.f32 %v1944_v27, %v1936_v12 }
 0x630   : > { %1755 = vmatpush3.msra.mxu1 %v1105_v21  ;;  %1756 = vmatprep.mubr.msk.f32.mxu1 %vm2266_vm0, %v2267_v1 }
 0x631   : > { %1764 = vmatprep.subr.mxu1 %v2267_v1 }
 0x633   : > { %1757 = vmatmul.mubr.msk.f32.vlgmr.msra.gmra.mrb[10].mxu1 %vm685_vm2, %v1103_v26 }
 0x634   : > { %1765 = vmatpush3.msra.mxu1 %v1271_v28  ;;  %1766 = vmatprep.mubr.msk.f32.mxu1 %vm2266_vm0, %v2267_v1 }
 0x637   : > { %1767 = vmatmul.mubr.msk.f32.vlgmr.msra.gmra.mrb[12].mxu1 %vm685_vm2, %v1269_v29 }
 0x702   : > { %v1010_v36 = vpop.f32.mrb[8].mxu1 }
 0x703   : > { %1347 = vrot.lane.b32.xlu0 %v1010_v36, %s2271_s4  ;;  %v1748_v37 = vpop.f32.mrb[9].mxu1 }
 0x706   : > { %v1176_v38 = vpop.f32.mrb[10].mxu1 }
 0x707   : > { %1351 = vrot.lane.b32.xlu1 %v1176_v38, %s2272_s23  ;;  %v1758_v1 = vpop.f32.mrb[11].mxu1 }
 0x70a   : > { %v1342_v39 = vpop.f32.mrb[12].mxu1 }
 0x70b   : > { %1355 = vrot.lane.b32.xlu0 %v1342_v39, %s2273_s25  ;;  %v1768_v40 = vpop.f32.mrb[13].mxu1 }
 0x775   : > { %v1348_v41 = vpop.permute.xlu0 %1347 }
 0x776   : > { %v1358_v42 = vsel %vm685_vm2, %v2732_v57, %v1348_v41 }
 0x779   : > { %v1352_v0 = vpop.permute.xlu1 %1351 }
 0x77a   : > { %v1360_v43 = vsel %vm1359_vm4, %v1358_v42, %v1352_v0 }
 0x77d   : > { %v1356_v44 = vpop.permute.xlu0 %1355 }
 0x77e   : > { %v1362_v45 = vsel %vm1361_vm5, %v1360_v43, %v1356_v44 }
 0x77f   : > { %1778 = vmatmul.mubr.msk.f32.vlgmr.msra.gmra.mrb[8].mxu0 %vm452_vm1, %v1362_v45 }
 0x852   : > { %v1436_v46 = vpop.f32.mrb[8].mxu0 }
 0x853   : > { %1440 = vst.msk [vmem:[%s444_s13] sm:$0xff] %vm452_vm1, %v1436_v46  ;;  %v1779_v47 = vpop.f32.mrb[9].mxu0 }
 0x854   : > { %2170 = shalt.err (!%p2167_p10)
}
 0x855   : > { %s2171_s0 = scalar_lea.hbm %s2767_s22, 128  ;;  %s2175_s9 = scalar_lea.hbm %s2888_s6, 256 }
 0x856   : > { %p2172_p8 = scmp.ne.s32.totalorder %s2767_s22, %s2171_s0  ;;  %p2176_p3 = scmp.lt.u32.totalorder %s2767_s22, %s2888_s6 }
 0x857   : > { %p2177_p7 = scmp.lt.u32.totalorder %s2175_s9, %s2171_s0  ;;  %p2179_p2 = scmp.lt.u32.totalorder %s2171_s0, %s2767_s22 }
 0x858   : > { %p2173_p6 = pnand %p2172_p8, %p2889_p5 }
 0x859   : > { %p2178_p13 = por %p2177_p7, %p2176_p3 }
 0x85a   : > { %p2174_p9 = pneg %p2173_p6 }
 0x85b   : > { %p2180_p4 = por %p2179_p2, %p2178_p13 }
 0x85d   : > { %p2181_p1 = pnand %p2180_p4, %p2174_p9 }
 0x85f   : > { %2184 = shalt.err (!%p2181_p1)
}
 0x860   : > { %1826 = dma.vmem_to_hbm [thread:$0]  (%p2889_p5), %s2769_s15, 128, %s2767_s22, %s1442_s2  }
 0x861 PF: > { %s2890_s11 = sld [smem:[#allocation23_spill]]  ;;  %s2891_s30 = sld [smem:[#allocation28_spill]] }
 0x862   : > { %s2892_s28 = sld [smem:[#allocation25_spill]] }
 0x867   : > { %s1468_s4 = sand.u32 1, %s2890_s11   ;;  %p2893_p11 = scmp.ne.s32.totalorder %s2891_s30, 0 }
 0x868   : > { %p2894_p12 = scmp.ge.s32.totalorder %s2892_s28, 2  ;;  %s1469_s23 = scalar_lea.sflag [#allocation6], %s1468_s4 }
 0x86a   : > { %p1852_p0 = pnand %p2894_p12, %p2893_p11 }
 0x86c   : > { %2228 = dma.done.wait (!%p1852_p0), %s1469_s23, 128  }
 0x86d   : > { %2230 = vsyncadd (!%p1852_p0), %s1469_s23, 4294967168  ;;  %s33_s19 = sadd.s32 1, %s2892_s28   ;;  %s2895_s12 = sld [smem:[#allocation27_spill]] }
 0x86e   : > { %p30_p10 = scmp.ge.s32.totalorder %s33_s19, 4   ;;  %s2896_s18 = sld [smem:[#allocation24_spill]] }
 0x86f   : > { %s2897_s0 = sld [smem:[#allocation26_spill]]  ;;  %s2898_s15 = smov %s2237_s16 }
 0x870   : > { %s2899_s16 = smov %s2241_s17  ;;  %32 = sbr.rel (!%p30_p10) target bundleno = 23 (0x17), region = 133 }
 0x873   : > { %s2900_s17 = smov %s2895_s12 }
 0x877   :  { %1474 = vsyncpa [#allocation5], 1 }
 0x878   :  { %1476 = vsyncpa [#allocation5 + $0x1], 1 }
 0x879   :  { %1477 = vsyncpa [#allocation8], 1 }
 0x87a   :  { %1479 = vsyncpa [#allocation8 + $0x1], 1 }
 0x87b   :  { %1480 = vsyncpa [#allocation11], 1 }
 0x87c   :  { %1481 = vsyncpa [#allocation14], 1 }
 0x87d   :  { %1482 = vsyncpa [#allocation6], 1 }
 0x87e   :  { %1484 = vsyncpa [#allocation6 + $0x1], 1 }

</bundles_post_ra>
